<compile_context>
chip_gen: v7x
topology: tpu7x:2x2x1
jax: 0.10.0
libtpu: 0.0.40
codegen_flags: <defaults>
</compile_context>

<pallas_src>
import jax
import jax.numpy as jnp
from jax.experimental import pallas as pl
from jax.experimental.pallas import tpu as pltpu  # noqa: F401


# ---------------------------------------------------------------------------
# Single fused kernel: patch-embed matmul + fc1 + fc2 + fc3, ReLUs in between.
# Shapes (example): patches (B, n*K*F), conv block-diag (n*K*F, n*dim),
# fc1 (n*dim, dim), fc2 (dim, dim), fc3 padded to (dim, NPAD).  All operands
# are tiny and fit comfortably in VMEM as full-array blocks.
# ---------------------------------------------------------------------------
def fused_net_kernel(p_ref, wc_ref, bc_ref,
                     w1_ref, b1_ref,
                     w2_ref, b2_ref,
                     w3_ref, b3_ref,
                     o_ref):
    # Patch embedding (Conv1d with stride == kernel_size), bias, ReLU.
    # Result is already laid out as (B, n*dim) thanks to the block-diagonal
    # conv weight, so no in-kernel reshape is required.
    h = jnp.dot(p_ref[...], wc_ref[...], preferred_element_type=jnp.float32)
    h = jnp.maximum(h + bc_ref[...], 0.0)                     # (B, n*dim) f32
    # max_pool1d(kernel_size=1) and Dropout(p=0.0) are identities.

    # fc1 + ReLU
    h = jnp.dot(h.astype(w1_ref.dtype), w1_ref[...],
                preferred_element_type=jnp.float32)
    h = jnp.maximum(h + b1_ref[...], 0.0)                     # (B, dim) f32

    # fc2 + ReLU
    h = jnp.dot(h.astype(w2_ref.dtype), w2_ref[...],
                preferred_element_type=jnp.float32)
    h = jnp.maximum(h + b2_ref[...], 0.0)                     # (B, dim) f32

    # fc3 (logits); output slab is lane-padded to a multiple of 128.
    out = jnp.dot(h.astype(w3_ref.dtype), w3_ref[...],
                  preferred_element_type=jnp.float32)
    o_ref[...] = (out + b3_ref[...]).astype(o_ref.dtype)      # (B, NPAD) f32


# ---------------------------------------------------------------------------
# Deterministic parameter init + one-time preprocessing (casts, reshapes,
# block-diagonal conv weight, lane padding of fc3) hoisted out of the forward.
# Note: PyTorch's Net creates fc1 lazily inside forward(); we create it here
# once `n` (number of patches) is known.
# ---------------------------------------------------------------------------
def init_params(key, *, feature_dim, dim, num_classes, kernel_size, stride, n):
    assert kernel_size == stride, "patch-embed path assumes kernel_size == stride"
    ks = jax.random.split(key, 8)
    scale = 0.02
    F, K = feature_dim, kernel_size

    # Raw parameters (same shapes as the PyTorch module).
    conv_w = scale * jax.random.normal(ks[0], (dim, F, K), jnp.float32)  # (O,C,K)
    conv_b = scale * jax.random.normal(ks[1], (dim,), jnp.float32)
    fc1_w = scale * jax.random.normal(ks[2], (n * dim, dim), jnp.float32)
    fc1_b = scale * jax.random.normal(ks[3], (dim,), jnp.float32)
    fc2_w = scale * jax.random.normal(ks[4], (dim, dim), jnp.float32)
    fc2_b = scale * jax.random.normal(ks[5], (dim,), jnp.float32)
    fc3_w = scale * jax.random.normal(ks[6], (dim, num_classes), jnp.float32)
    fc3_b = scale * jax.random.normal(ks[7], (num_classes,), jnp.float32)

    # conv weight flattened so that row index = k*F + c, matching the patch
    # flattening x[b, p*K + k, c] -> column (k*F + c) of a (K*F)-long row.
    wc_flat = jnp.transpose(conv_w, (2, 1, 0)).reshape(K * F, dim)
    # Block-diagonal conv weight: (n*K*F, n*dim); output lands directly in the
    # (B, n*dim) layout fc1 expects (no in-kernel reshape).
    wc_bd = jnp.kron(jnp.eye(n, dtype=jnp.float32), wc_flat)

    npad = ((num_classes + 127) // 128) * 128  # lane-dense final output width
    w3_pad = jnp.zeros((dim, npad), jnp.float32).at[:, :num_classes].set(fc3_w)
    b3_pad = jnp.zeros((1, npad), jnp.float32).at[0, :num_classes].set(fc3_b)

    return {
        "kernel_size": K,
        "stride": stride,
        "n": n,
        "dim": dim,
        "num_classes": num_classes,
        "npad": npad,
        # bf16 MXU operands (cast once, here), f32 biases in (1, N) layout.
        "wc_bd": wc_bd.astype(jnp.bfloat16),
        "bc_tiled": jnp.tile(conv_b, n).reshape(1, n * dim),
        "fc1_w": fc1_w.astype(jnp.bfloat16),
        "fc1_b": fc1_b.reshape(1, dim),
        "fc2_w": fc2_w.astype(jnp.bfloat16),
        "fc2_b": fc2_b.reshape(1, dim),
        "w3_pad": w3_pad.astype(jnp.bfloat16),
        "b3_pad": b3_pad,
    }


# ---------------------------------------------------------------------------
# Forward pass: one contiguous reshape + ONE fused pallas_call + final slice.
# ---------------------------------------------------------------------------
def net_forward(params, x):
    B, L, F = x.shape
    K = params["kernel_size"]
    S = params["stride"]
    n = params["n"]
    npad = params["npad"]

    # Non-overlapping patch flatten (contiguous, cheap):
    # patches[b, p*K*F + k*F + c] = x[b, p*S + k, c]   (S == K)
    patches = x[:, : n * S, :].reshape(B, n * K * F).astype(jnp.bfloat16)

    out_pad = pl.pallas_call(
        fused_net_kernel,
        out_shape=jax.ShapeDtypeStruct((B, npad), jnp.float32),
        # grid=() / no BlockSpecs: full-array VMEM blocks, single invocation.
    )(
        patches,
        params["wc_bd"], params["bc_tiled"],
        params["fc1_w"], params["fc1_b"],
        params["fc2_w"], params["fc2_b"],
        params["w3_pad"], params["b3_pad"],
    )
    return out_pad[:, : params["num_classes"]]   # (B, num_classes)


if __name__ == "__main__":
    # Small shapes consistent with the module's forward.
    B, L, F = 2, 40, 8            # batch, sequence length, feature_dim
    dim = 32
    num_classes = 10
    kernel_size = stride = 10
    n = (L - kernel_size) // stride + 1   # = 4 patches

    key = jax.random.PRNGKey(0)
    k_x, k_p = jax.random.split(key)
    x = jax.random.normal(k_x, (B, L, F), jnp.float32)
    params = init_params(
        k_p, feature_dim=F, dim=dim, num_classes=num_classes,
        kernel_size=kernel_size, stride=stride, n=n)

    out = net_forward(params, x)
    out = jax.block_until_ready(out)
    assert out.shape == (B, num_classes), out.shape
    assert bool(jnp.all(jnp.isfinite(out)))
    print("KERNEL_OK")
</pallas_src>

<mosaic_0001>
module attributes {stable_mosaic.version = 11 : i64} {
  func.func @fused_net_kernel(%arg0: memref<2x320xbf16, #tpu.memory_space<vmem>>, %arg1: memref<320x128xbf16, #tpu.memory_space<vmem>>, %arg2: memref<1x128xf32, #tpu.memory_space<vmem>>, %arg3: memref<128x32xbf16, #tpu.memory_space<vmem>>, %arg4: memref<1x32xf32, #tpu.memory_space<vmem>>, %arg5: memref<32x32xbf16, #tpu.memory_space<vmem>>, %arg6: memref<1x32xf32, #tpu.memory_space<vmem>>, %arg7: memref<32x128xbf16, #tpu.memory_space<vmem>>, %arg8: memref<1x128xf32, #tpu.memory_space<vmem>>, %arg9: memref<2x128xf32, #tpu.memory_space<vmem>>) attributes {dimension_semantics = [], scalar_prefetch = 0 : i64, scratch_operands = 0 : i64, tpu.core_type = #tpu.core_type<tc>} {
    %c0 = arith.constant 0 : index
    %c0_0 = arith.constant 0 : index
    %0 = vector.load %arg0[%c0, %c0_0] : memref<2x320xbf16, #tpu.memory_space<vmem>>, vector<2x320xbf16>
    %c0_1 = arith.constant 0 : index
    %c0_2 = arith.constant 0 : index
    %1 = vector.load %arg1[%c0_1, %c0_2] : memref<320x128xbf16, #tpu.memory_space<vmem>>, vector<320x128xbf16>
    %cst = arith.constant dense<0.000000e+00> : vector<2x128xf32>
    %2 = tpu.matmul %0, %1, %cst {dimension_numbers = #tpu.dot_dimension_numbers<[1], [0], [0], [1], [0, 0, 1, 1], [], []>} : vector<2x320xbf16>, vector<320x128xbf16>, vector<2x128xf32> -> vector<2x128xf32>
    %c0_3 = arith.constant 0 : index
    %c0_4 = arith.constant 0 : index
    %3 = vector.load %arg2[%c0_3, %c0_4] : memref<1x128xf32, #tpu.memory_space<vmem>>, vector<1x128xf32>
    %4 = vector.broadcast %3 : vector<1x128xf32> to vector<2x128xf32>
    %5 = arith.addf %2, %4 : vector<2x128xf32>
    %cst_5 = arith.constant 0.000000e+00 : f32
    %6 = vector.broadcast %cst_5 : f32 to vector<2x128xf32>
    %7 = arith.maximumf %5, %6 : vector<2x128xf32>
    %8 = arith.truncf %7 : vector<2x128xf32> to vector<2x128xbf16>
    %c0_6 = arith.constant 0 : index
    %c0_7 = arith.constant 0 : index
    %9 = vector.load %arg3[%c0_6, %c0_7] : memref<128x32xbf16, #tpu.memory_space<vmem>>, vector<128x32xbf16>
    %cst_8 = arith.constant dense<0.000000e+00> : vector<2x32xf32>
    %10 = tpu.matmul %8, %9, %cst_8 {dimension_numbers = #tpu.dot_dimension_numbers<[1], [0], [0], [1], [0, 0, 1, 1], [], []>} : vector<2x128xbf16>, vector<128x32xbf16>, vector<2x32xf32> -> vector<2x32xf32>
    %c0_9 = arith.constant 0 : index
    %c0_10 = arith.constant 0 : index
    %11 = vector.load %arg4[%c0_9, %c0_10] : memref<1x32xf32, #tpu.memory_space<vmem>>, vector<1x32xf32>
    %12 = vector.broadcast %11 : vector<1x32xf32> to vector<2x32xf32>
    %13 = arith.addf %10, %12 : vector<2x32xf32>
    %cst_11 = arith.constant 0.000000e+00 : f32
    %14 = vector.broadcast %cst_11 : f32 to vector<2x32xf32>
    %15 = arith.maximumf %13, %14 : vector<2x32xf32>
    %16 = arith.truncf %15 : vector<2x32xf32> to vector<2x32xbf16>
    %c0_12 = arith.constant 0 : index
    %c0_13 = arith.constant 0 : index
    %17 = vector.load %arg5[%c0_12, %c0_13] : memref<32x32xbf16, #tpu.memory_space<vmem>>, vector<32x32xbf16>
    %cst_14 = arith.constant dense<0.000000e+00> : vector<2x32xf32>
    %18 = tpu.matmul %16, %17, %cst_14 {dimension_numbers = #tpu.dot_dimension_numbers<[1], [0], [0], [1], [0, 0, 1, 1], [], []>} : vector<2x32xbf16>, vector<32x32xbf16>, vector<2x32xf32> -> vector<2x32xf32>
    %c0_15 = arith.constant 0 : index
    %c0_16 = arith.constant 0 : index
    %19 = vector.load %arg6[%c0_15, %c0_16] : memref<1x32xf32, #tpu.memory_space<vmem>>, vector<1x32xf32>
    %20 = vector.broadcast %19 : vector<1x32xf32> to vector<2x32xf32>
    %21 = arith.addf %18, %20 : vector<2x32xf32>
    %cst_17 = arith.constant 0.000000e+00 : f32
    %22 = vector.broadcast %cst_17 : f32 to vector<2x32xf32>
    %23 = arith.maximumf %21, %22 : vector<2x32xf32>
    %24 = arith.truncf %23 : vector<2x32xf32> to vector<2x32xbf16>
    %c0_18 = arith.constant 0 : index
    %c0_19 = arith.constant 0 : index
    %25 = vector.load %arg7[%c0_18, %c0_19] : memref<32x128xbf16, #tpu.memory_space<vmem>>, vector<32x128xbf16>
    %cst_20 = arith.constant dense<0.000000e+00> : vector<2x128xf32>
    %26 = tpu.matmul %24, %25, %cst_20 {dimension_numbers = #tpu.dot_dimension_numbers<[1], [0], [0], [1], [0, 0, 1, 1], [], []>} : vector<2x32xbf16>, vector<32x128xbf16>, vector<2x128xf32> -> vector<2x128xf32>
    %c0_21 = arith.constant 0 : index
    %c0_22 = arith.constant 0 : index
    %27 = vector.load %arg8[%c0_21, %c0_22] : memref<1x128xf32, #tpu.memory_space<vmem>>, vector<1x128xf32>
    %28 = vector.broadcast %27 : vector<1x128xf32> to vector<2x128xf32>
    %29 = arith.addf %26, %28 : vector<2x128xf32>
    %c0_23 = arith.constant 0 : index
    %c0_24 = arith.constant 0 : index
    %30 = vector.load %arg9[%c0_23, %c0_24] : memref<2x128xf32, #tpu.memory_space<vmem>>, vector<2x128xf32>
    tpu.vector_store %arg9[%c0_23, %c0_24], %29 {strides = array<i32>} : memref<2x128xf32, #tpu.memory_space<vmem>>, vector<2x128xf32>,
    return
  }
}

</mosaic_0001>

<bundles_post_ra>
// kernel: tpu_custom_call.1
= control target key start
LH: loop header
LB: loop body
LE: loop exit
PB: predicated region body
PF: predicated region fallthrough
CT: control target
= control target key end

     0   :  { %14 = vsyncpa [#allocation3], 0  ;;  %s967_s0 = inlined_call_operand.vmem [shape: bf16[2,320], index: 0, kind: input, shape index: {}]   ;;  %s968_s1 = inlined_call_operand.hbm [shape: bf16[320,128], index: 1, kind: input, shape index: {}]   ;;  %s969_s2 = inlined_call_operand.vmem [shape: f32[1,128], index: 2, kind: input, shape index: {}]   ;;  %s970_s3 = inlined_call_operand.vmem [shape: bf16[128,32], index: 3, kind: input, shape index: {}]   ;;  %s971_s4 = inlined_call_operand.vmem [shape: f32[1,32], index: 4, kind: input, shape index: {}]   ;;  %s972_s5 = inlined_call_operand.vmem [shape: bf16[32,32], index: 5, kind: input, shape index: {}]   ;;  %s973_s6 = inlined_call_operand.vmem [shape: f32[1,32], index: 6, kind: input, shape index: {}]   ;;  %s974_s7 = inlined_call_operand.vmem [shape: bf16[32,128], index: 7, kind: input, shape index: {}]   ;;  %s975_s8 = inlined_call_operand.vmem [shape: f32[1,128], index: 8, kind: input, shape index: {}]   ;;  %s976_s9 = inlined_call_operand.hbm [shape: f32[2,128], index: 9, kind: output, shape index: {}]  }
   0x1   :  { %15 = vsyncpa [#allocation4], 0  ;;  %s809_s30 = smov [#allocation2]   ;;  %s761_s13 = scalar_lea.hbm %s968_s1, 2560 }
   0x2   :  { %s23_s10 = sshll.u32 %s809_s30, 4  ;;  %p762_p0 = scmp.ne.s32.totalorder %s968_s1, %s761_s13  ;;  %s24_s10 = int_to_ptr.vmem [resolvable:$true] %s23_s10 }
   0x3   :  { %p765_p1 = scmp.lt.u32.totalorder %s761_s13, %s968_s1 }
   0x5   :  { %p767_p2 = pnand %p765_p1, %p762_p0 }
   0x7   :  { %770 = shalt.err (!%p767_p2)
}
   0x8   :  { %s771_s18 = scalar_lea.vmem %s24_s10, 2560  ;;  %p776_p4 = scmp.lt.s32.totalorder %s24_s10, %s24_s10 }
   0x9   :  { %p772_p3 = scmp.ne.s32.totalorder %s24_s10, %s771_s18  ;;  %p777_p5 = scmp.lt.s32.totalorder %s771_s18, %s771_s18 }
   0xb   :  { %p778_p6 = por %p777_p5, %p776_p4 }
   0xd   :  { %p779_p7 = pnand %p778_p6, %p772_p3 }
   0xf   :  { %782 = shalt.err (!%p779_p7)
}
  0x10   :  { %s810_s19 = smov 64   ;;  %s811_s20 = smov 4  }
  0x11   :  { %29 = dma.hbm_to_vmem [thread:$0]  %s968_s1, 2560, %s24_s10, [#allocation3], %s810_s19, %s810_s19, %s811_s20  }
  0x12   :  { %805 = dma.done.wait [#allocation3], 2560  }
  0x13   :  { %806 = vsyncadd [#allocation3], 4294964736  ;;  %v812_v0 = vmov 0.0   ;;  %vm813_vm0 = vmmov 0   ;;  %v729_v1 = vld [vmem:[#allocation2 + $0x40] sm:$0xff]   ;;  %v731_v3 = vld [vmem:[#allocation2 + $0x48] sm:$0xff]   ;;  %v108_v10 = vlaneseq }
  0x14   :  { %674 = vmatprep.subr.bf16.mxu1 %v812_v0  ;;  %682 = vmatprep.mubr.msk.bf16.mxu1 %vm813_vm0, %v812_v0  ;;  %v730_v2 = vld [vmem:[#allocation2] sm:$0xff]   ;;  %v732_v4 = vld [vmem:[#allocation2 + $0x8] sm:$0xff]   ;;  %v733_v5 = vld [vmem:[#allocation2 + $0x50] sm:$0xff]   ;;  %v814_v8 = vmov 1966171168   ;;  %vm242_vm1 = vcmask 523264  }
  0x15   :  { %632 = vmatprep.subr.bf16.mxu0 %v729_v1  ;;  %v734_v6 = vld [vmem:[#allocation2 + $0x10] sm:$0xff]   ;;  %v735_v7 = vld [vmem:[#allocation2 + $0x58] sm:$0xff]   ;;  %v106_v9 = vunpack.c.l.s4 %v814_v8  ;;  %v739_v11 = vld [vmem:[#allocation2 + $0x80] sm:$0xff]   ;;  %v109_v15 = vshrl.u32 %v108_v10, 7  ;;  %vm464_vm2 = vcmask 261120   ;;  %s815_s28 = smov [#allocation5]  }
  0x16   :  { %633 = vmatpush3.bf16.msra.mxu0 %v730_v2  ;;  %v736_v12 = vld [vmem:[#allocation2 + $0x18] sm:$0xff]   ;;  %v737_v13 = vld [vmem:[#allocation2 + $0x60] sm:$0xff]   ;;  %675 = vmatpush3.bf16.msra.mxu1 %v739_v11  ;;  %v742_v16 = vld [vmem:[#allocation2 + $0x88] sm:$0xff]  }
  0x17   :  { %634 = vmatprep.subr.bf16.mxu0 %v731_v3  ;;  %v107_v14 = vunpack.c.0.s8 %v106_v9  ;;  %676 = vmatprep.subr.bf16.mxu1 %v812_v0  ;;  %v738_v17 = vld [vmem:[#allocation2 + $0x20] sm:$0xff]   ;;  %v740_v18 = vld [vmem:[#allocation2 + $0x68] sm:$0xff]   ;;  %v745_v19 = vld [vmem:[#allocation2 + $0x90] sm:$0xff]  }
  0x18   :  { %v741_v21 = vld [vmem:[#allocation2 + $0x28] sm:$0xff]   ;;  %v593_v22 = vld.sshfl [vmem:[%s967_s0] sm:$0x13 pattern:$0x75316420]  ;;  %v743_v23 = vld [vmem:[#allocation2 + $0x70] sm:$0xff]  }
  0x19   :  { %v110_v20 = vsub.s32 %v107_v14, %v109_v15  ;;  %v104_v24 = vcombine.high %v593_v22, %v593_v22  ;;  %v748_v26 = vld [vmem:[#allocation2 + $0x98] sm:$0xff]   ;;  %v744_v28 = vld [vmem:[#allocation2 + $0x30] sm:$0xff]   ;;  %v749_v32 = vld [vmem:[%s970_s3] sm:$0xff]  }
  0x1a   :  { %635 = vmatpush3.bf16.msra.mxu0 %v732_v4  ;;  %677 = vmatpush3.bf16.msra.mxu1 %v742_v16  ;;  %v746_v29 = vld [vmem:[#allocation2 + $0x78] sm:$0xff]   ;;  %v750_v33 = vld [vmem:[%s970_s3 + $0x8] sm:$0xff]   ;;  %v751_v34 = vld [vmem:[%s970_s3 + $0x10] sm:$0xff]  }
  0x1b   :  { %636 = vmatprep.subr.bf16.mxu0 %v733_v5  ;;  %678 = vmatprep.subr.bf16.mxu1 %v812_v0  ;;  %v111_v25 = vrot.slane %v593_v22, %v110_v20  ;;  %v118_v27 = vrot.slane %v104_v24, %v110_v20  ;;  %v747_v31 = vld [vmem:[#allocation2 + $0x38] sm:$0xff]   ;;  %v753_v36 = vld [vmem:[%s970_s3 + $0x20] sm:$0xff]   ;;  %v754_v37 = vld [vmem:[%s970_s3 + $0x28] sm:$0xff]  }
  0x1c   :  { %v752_v35 = vld [vmem:[%s970_s3 + $0x18] sm:$0xff]   ;;  %v755_v38 = vld [vmem:[%s970_s3 + $0x30] sm:$0xff]   ;;  %v757_v40 = vld [vmem:[%s972_s5] sm:$0xff]  }
  0x1d   :  { %278 = vmatprep.mubr.bf16.mxu0 %v118_v27  ;;  %v119_v30 = vcombine.high %v111_v25, %v111_v25  ;;  %v756_v39 = vld [vmem:[%s970_s3 + $0x38] sm:$0xff]   ;;  %v592_v47 = vld [vmem:[%s969_s2] ss:$0 sm:$0xff]  ;;  %v758_v55 = vld [vmem:[%s972_s5 + $0x8] sm:$0xff]  }
  0x1e   :  { %637 = vmatpush3.bf16.msra.mxu0 %v734_v6  ;;  %679 = vmatpush3.bf16.msra.mxu1 %v745_v19  ;;  %v615_v56 = vld [vmem:[%s971_s4] ss:$0 sm:$0xff]  ;;  %v760_v2 = vld [vmem:[%s974_s7 + $0x8] sm:$0xff]  }
  0x1f   :  { %638 = vmatprep.subr.bf16.mxu0 %v735_v7  ;;  %680 = vmatprep.subr.bf16.mxu1 %v812_v0  ;;  %v759_v63 = vld [vmem:[%s974_s7] sm:$0xff]   ;;  %s583_s7 = sshll.u32 %s815_s28, 4  ;;  %s584_s7 = int_to_ptr.vmem [resolvable:$true] %s583_s7 }
  0x20   :  { %v624_v3 = vld [vmem:[%s973_s6] ss:$0 sm:$0xff]  ;;  %s783_s6 = scalar_lea.vmem %s584_s7, 32  ;;  %p788_p9 = scmp.lt.s32.totalorder %s584_s7, %s584_s7 }
  0x21   :  { %p784_p8 = scmp.ne.s32.totalorder %s584_s7, %s783_s6  ;;  %p789_p10 = scmp.lt.s32.totalorder %s783_s6, %s783_s6 }
  0x22   :  { %639 = vmatpush3.bf16.msra.mxu0 %v736_v12  ;;  %681 = vmatpush3.bf16.msra.mxu1 %v748_v26 }
  0x23   :  { %640 = vmatprep.subr.bf16.mxu0 %v737_v13  ;;  %686 = vmatprep.subr.bf16.mxu1 %v812_v0  ;;  %p790_p11 = por %p789_p10, %p788_p9 }
  0x25   :  { %683 = vmatmul.mubr.msk.bf16.vlgmr.msra.gmra.mrb[0].mxu1 %vm242_vm1, %v119_v30  ;;  %p791_p12 = pnand %p790_p11, %p784_p8 }
  0x26   :  { %641 = vmatpush3.bf16.msra.mxu0 %v738_v17  ;;  %687 = vmatpush3.bf16.msra.mxu1 %v749_v32 }
  0x27   :  { %642 = vmatprep.subr.bf16.mxu0 %v740_v18  ;;  %702 = vmatprep.mubr.msk.bf16.mxu1 %vm813_vm0, %v812_v0 }
  0x28   :  { %688 = vmatprep.subr.bf16.mxu1 %v812_v0 }
  0x2a   :  { %643 = vmatpush3.bf16.msra.mxu0 %v741_v21  ;;  %689 = vmatpush3.bf16.msra.mxu1 %v750_v33 }
  0x2b   :  { %644 = vmatprep.subr.bf16.mxu0 %v743_v23  ;;  %690 = vmatprep.subr.bf16.mxu1 %v812_v0 }
  0x2e   :  { %645 = vmatpush3.bf16.msra.mxu0 %v744_v28  ;;  %691 = vmatpush3.bf16.msra.mxu1 %v751_v34 }
  0x2f   :  { %646 = vmatprep.subr.bf16.mxu0 %v746_v29  ;;  %692 = vmatprep.subr.bf16.mxu1 %v812_v0 }
  0x32   :  { %647 = vmatpush3.bf16.msra.mxu0 %v747_v31  ;;  %693 = vmatpush3.bf16.msra.mxu1 %v752_v35 }
  0x33   :  { %706 = vmatprep.subr.bf16.mxu0 %v812_v0  ;;  %694 = vmatprep.subr.bf16.mxu1 %v812_v0 }
  0x35   :  { %279 = vmatmul.mubr.bf16.vlgmr.msra.gmra.mrb[0].mxu0 %v111_v25 }
  0x36   :  { %710 = vmatprep.mubr.msk.bf16.mxu0 %vm813_vm0, %v812_v0  ;;  %695 = vmatpush3.bf16.msra.mxu1 %v753_v36 }
  0x37   :  { %696 = vmatprep.subr.bf16.mxu1 %v812_v0  ;;  %707 = vmatpush3.bf16.msra.mxu0 %v757_v40 }
  0x38   :  { %708 = vmatprep.subr.bf16.mxu0 %v812_v0 }
  0x3a   :  { %697 = vmatpush3.bf16.msra.mxu1 %v754_v37 }
  0x3b   :  { %698 = vmatprep.subr.bf16.mxu1 %v812_v0  ;;  %709 = vmatpush3.bf16.msra.mxu0 %v758_v55 }
  0x3c   :  { %714 = vmatprep.subr.bf16.mxu0 %v812_v0 }
  0x3e   :  { %699 = vmatpush3.bf16.msra.mxu1 %v755_v38 }
  0x3f   :  { %700 = vmatprep.subr.bf16.mxu1 %v812_v0 }
  0x42   :  { %701 = vmatpush3.bf16.msra.mxu1 %v756_v39 }
  0xf8   :  { %v320_v41 = vpop.f32.mrb[0].mxu1 }
  0xf9   :  { %v684_v42 = vpop.f32.mrb[1].mxu1 }
  0xfa   :  { %v323_v43 = vpop.f32.mrb[2].mxu1 }
  0xfb   :  { %v685_v44 = vpop.f32.mrb[3].mxu1 }
 0x108   :  { %v648_v45 = vpop.f32.mrb[0].mxu0 }
 0x109   :  { %v649_v46 = vpop.f32.mrb[1].mxu0 }
 0x10a   :  { %v650_v48 = vadd.f32 %v649_v46, %v648_v45  ;;  %v651_v49 = vpop.f32.mrb[2].mxu0 }
 0x10b   :  { %v652_v50 = vpop.f32.mrb[3].mxu0 }
 0x10c   :  { %v281_v51 = vadd.f32 %v650_v48, %v592_v47 }
 0x10e   :  { %v321_v52 = vadd.f32 %v320_v41, %v281_v51 }
 0x110   :  { %v326_v53 = vmax.f32 %v321_v52, 0.0 }
 0x112   :  { %v327_v54 = vpack.c.bf16 %v326_v53, %v326_v53 }
 0x114   :  { %703 = vmatmul.mubr.bf16.vlgmr.msra.gmra.mrb[4].mxu1 %v327_v54 }
 0x1e7   :  { %v433_v57 = vpop.f32.mrb[4].mxu1 }
 0x1e8   :  { %v434_v58 = vadd.f32 %v615_v56, %v433_v57  ;;  %v704_v59 = vpop.f32.mrb[5].mxu1 }
 0x1e9   :  { %v436_v60 = vpop.f32.mrb[6].mxu1 }
 0x1ea   :  { %v439_v61 = vmax.f32 %v434_v58, 0.0  ;;  %v705_v62 = vpop.f32.mrb[7].mxu1 }
 0x1ec   :  { %v440_v1 = vpack.c.bf16 %v439_v61, %v439_v61 }
 0x1ee   :  { %711 = vmatmul.mubr.msk.bf16.vlgmr.msra.gmra.mrb[4].mxu0 %vm464_vm2, %v440_v1 }
 0x1ef   :  { %715 = vmatpush3.bf16.msra.mxu0 %v759_v63  ;;  %718 = vmatprep.mubr.msk.bf16.mxu0 %vm813_vm0, %v812_v0 }
 0x1f0   :  { %716 = vmatprep.subr.bf16.mxu0 %v812_v0  ;;  %v628_v0 = vld [vmem:[%s975_s8] ss:$0 sm:$0xff] }
 0x1f3   :  { %717 = vmatpush3.bf16.msra.mxu0 %v760_v2 }
 0x2c1   :  { %v502_v4 = vpop.f32.mrb[4].mxu0 }
 0x2c2   :  { %v503_v5 = vadd.f32 %v624_v3, %v502_v4  ;;  %v712_v6 = vpop.f32.mrb[5].mxu0 }
 0x2c3   :  { %v505_v7 = vpop.f32.mrb[6].mxu0 }
 0x2c4   :  { %v508_v8 = vmax.f32 %v503_v5, 0.0  ;;  %v713_v9 = vpop.f32.mrb[7].mxu0 }
 0x2c6   :  { %v509_v10 = vpack.c.bf16 %v508_v8, %v508_v8 }
 0x2c8   :  { %719 = vmatmul.mubr.msk.bf16.vlgmr.msra.gmra.mrb[8].mxu0 %vm464_vm2, %v509_v10 }
 0x39b   :  { %v570_v11 = vpop.f32.mrb[8].mxu0 }
 0x39c   :  { %v571_v12 = vadd.f32 %v628_v0, %v570_v11  ;;  %v720_v13 = vpop.f32.mrb[9].mxu0 }
 0x39d   :  { %v573_v14 = vpop.f32.mrb[10].mxu0 }
 0x39e   :  { %576 = vst [vmem:[#allocation5] sm:$0x3] %v571_v12  ;;  %v721_v15 = vpop.f32.mrb[11].mxu0 }
 0x39f   :  { %794 = shalt.err (!%p791_p12)
}
 0x3a0   :  { %s795_s8 = scalar_lea.hbm %s976_s9, 32 }
 0x3a1   :  { %p796_p13 = scmp.ne.s32.totalorder %s976_s9, %s795_s8  ;;  %p799_p0 = scmp.lt.u32.totalorder %s795_s8, %s976_s9 }
 0x3a3   :  { %p801_p1 = pnand %p799_p0, %p796_p13 }
 0x3a5   :  { %804 = shalt.err (!%p801_p1)
}
 0x3a6   :  { %586 = dma.vmem_to_hbm [thread:$0]  %s584_s7, 32, %s976_s9, [#allocation4]  }
 0x3a7   :  { %807 = dma.done.wait [#allocation4], 32  }
 0x3a8   :  { %808 = vsyncadd [#allocation4], 4294967264 }
 0x3a9   :  { %590 = vsyncpa [#allocation3], 1 }
 0x3aa   :  { %591 = vsyncpa [#allocation4], 1 }

</bundles_post_ra>
